<compile_context>
chip_gen: v6e
topology: v6e:2x2x1
jax: 0.10.0
libtpu: 0.0.40
codegen_flags: <defaults>
</compile_context>

<pallas_src>
import functools

import jax
import jax.numpy as jnp
from jax.experimental import pallas as pl
from jax.experimental.pallas import tpu as pltpu


def _round_up(v, m):
    return (v + m - 1) // m * m


# ----------------------------------------------------------------------------
# Fused kernel: pre-MLP + L mixed layers + post-MLP in one pallas_call.
# Grid = (num_layers,); hidden state persists in a VMEM scratch.
# ----------------------------------------------------------------------------
def _supernet_kernel(hidden_dim,
                     alpha_ref,              # SMEM [L, 3] softmax'd arch params
                     x_in_ref,               # VMEM [Np, Fip] f32   (resident)
                     adj_ref,                # VMEM [Np, Np]  bf16  (resident)
                     w_pre_ref, b_pre_ref,   # resident
                     wc_ref, bc_ref,         # streamed per layer
                     w_post_ref, b_post_ref,  # resident
                     out_ref,                # [Np, Op] f32, written at last layer
                     x_state):               # VMEM scratch [Np, Hp] f32, persists
    l = pl.program_id(0)
    n_layers = pl.num_programs(0)

    # ---- pre_process_mlp, only at the first grid step -----------------------
    @pl.when(l == 0)
    def _pre():
        x_state[...] = (
            jnp.dot(x_in_ref[...], w_pre_ref[...],
                    preferred_element_type=jnp.float32)
            + b_pre_ref[...]
        )

    x = x_state[...]                                     # [Np, Hp] f32

    a_conv = alpha_ref[l, 0]
    a_norm = alpha_ref[l, 1]
    a_act = alpha_ref[l, 2]

    # ---- ConvPool candidate: GCN  A_norm @ (x @ Wc) + bc ---------------------
    # bf16 MXU operands, f32 accumulation; xW computed once, then one A @ xW.
    xw = jnp.dot(x.astype(jnp.bfloat16), wc_ref[0],
                 preferred_element_type=jnp.float32)
    conv = (
        jnp.dot(adj_ref[...], xw.astype(jnp.bfloat16),
                preferred_element_type=jnp.float32)
        + bc_ref[0]
    )

    # ---- NormPool candidate: LayerNorm over the real hidden columns ---------
    # One-pass stats (padded lanes of x are identically zero, so full-width
    # sums equal real-column sums); a_norm folded into the rsqrt scale; lane
    # mask keeps padded columns exactly zero for subsequent layers.
    inv_h = 1.0 / float(hidden_dim)
    s1 = jnp.sum(x, axis=-1, keepdims=True)
    s2 = jnp.sum(x * x, axis=-1, keepdims=True)
    mu = s1 * inv_h
    var = jnp.maximum(s2 * inv_h - mu * mu, 0.0)
    scale = a_norm * jax.lax.rsqrt(var + 1e-5)
    col = jax.lax.broadcasted_iota(jnp.int32, x.shape, 1)
    ln = jnp.where(col < hidden_dim, (x - mu) * scale, 0.0)

    # ---- ActPool candidate: ReLU(a_act * x) == a_act * ReLU(x)  (a_act > 0) --
    x_new = a_conv * conv + ln + a_act * jnp.maximum(x, 0.0)
    x_state[...] = x_new

    # ---- post_process_mlp, only at the last grid step ------------------------
    @pl.when(l == n_layers - 1)
    def _post():
        out_ref[...] = (
            jnp.dot(x_new, w_post_ref[...],
                    preferred_element_type=jnp.float32)
            + b_post_ref[...]
        )


# ----------------------------------------------------------------------------
# Glue: normalized dense adjacency from edge_index (GCN convention,
# scatter-add so duplicate edges accumulate, plus self loops,
# symmetric in-degree normalization — matches PyG gcn_norm).
# ----------------------------------------------------------------------------
def build_norm_adj(edge_index, num_nodes):
    src = edge_index[0]
    dst = edge_index[1]
    adj = jnp.zeros((num_nodes, num_nodes), jnp.float32)
    adj = adj.at[dst, src].add(1.0)                  # out[dst] += x[src]
    adj = adj + jnp.eye(num_nodes, dtype=jnp.float32)
    deg = jnp.sum(adj, axis=1)                       # in-degree (+1 self loop)
    dinv = jax.lax.rsqrt(jnp.maximum(deg, 1e-12))
    return adj * dinv[:, None] * dinv[None, :]


# ----------------------------------------------------------------------------
# The full supernet: parameters stored pre-padded / pre-stacked; forward is a
# single fused pallas_call plus a little padding / softmax glue.
# ----------------------------------------------------------------------------
class CoupledSuperNetPallas:
    def __init__(self, input_dim, hidden_dim, output_dim, num_layers, key):
        self.input_dim = input_dim
        self.hidden_dim = hidden_dim
        self.output_dim = output_dim
        self.num_layers = num_layers

        # lane-dense padded feature dims (last block dim multiple of 128)
        self.fip = _round_up(input_dim, 128)
        self.hp = _round_up(hidden_dim, 128)
        self.op = _round_up(output_dim, 128)

        keys = jax.random.split(key, 2 + 2 * num_layers)
        s = 0.1
        w_pre = s * jax.random.normal(keys[0], (input_dim, hidden_dim), jnp.float32)
        w_post = s * jax.random.normal(keys[1], (hidden_dim, output_dim), jnp.float32)

        self.w_pre = jnp.zeros((self.fip, self.hp), jnp.float32) \
            .at[:input_dim, :hidden_dim].set(w_pre)
        self.b_pre = jnp.zeros((1, self.hp), jnp.float32)
        self.w_post = jnp.zeros((self.hp, self.op), jnp.float32) \
            .at[:hidden_dim, :output_dim].set(w_post)
        self.b_post = jnp.zeros((1, self.op), jnp.float32)

        wc, alphas = [], []
        for l in range(num_layers):
            w = s * jax.random.normal(
                keys[2 + 2 * l], (hidden_dim, hidden_dim), jnp.float32)
            wc.append(jnp.zeros((self.hp, self.hp), jnp.float32)
                      .at[:hidden_dim, :hidden_dim].set(w))
            # nn.init.uniform_ -> U[0, 1), 3 operation candidates per layer
            alphas.append(jax.random.uniform(keys[3 + 2 * l], (3,), jnp.float32))

        # stacked per-layer params: bf16 MXU weights, f32 bias, f32 alphas
        self.wc_f32 = jnp.stack(wc)                              # [L, Hp, Hp] (for ref)
        self.wc = self.wc_f32.astype(jnp.bfloat16)               # [L, Hp, Hp]
        self.bc = jnp.zeros((num_layers, 1, self.hp), jnp.float32)
        self.alphas = jnp.stack(alphas)                          # [L, 3]

    # ---------------- Pallas forward ----------------
    def __call__(self, x, edge_index):
        n = x.shape[0]
        np_ = _round_up(n, 16)   # sublane padding (bf16 adjacency packing)

        adj = build_norm_adj(edge_index, n)
        adj_p = jnp.zeros((np_, np_), jnp.float32) \
            .at[:n, :n].set(adj).astype(jnp.bfloat16)
        x_p = jnp.zeros((np_, self.fip), jnp.float32) \
            .at[:n, :self.input_dim].set(x)

        # tiny glue, like F.softmax on the architecture parameters
        alphas_sm = jax.nn.softmax(self.alphas, axis=-1)         # [L, 3]

        kernel = functools.partial(_supernet_kernel, self.hidden_dim)
        L, fip, hp, op = self.num_layers, self.fip, self.hp, self.op

        grid_spec = pltpu.PrefetchScalarGridSpec(
            num_scalar_prefetch=1,
            grid=(L,),
            in_specs=[
                pl.BlockSpec((np_, fip), lambda l, a: (0, 0)),       # x_in  (resident)
                pl.BlockSpec((np_, np_), lambda l, a: (0, 0)),       # adj   (resident)
                pl.BlockSpec((fip, hp), lambda l, a: (0, 0)),        # w_pre (resident)
                pl.BlockSpec((1, hp), lambda l, a: (0, 0)),          # b_pre
                pl.BlockSpec((1, hp, hp), lambda l, a: (l, 0, 0)),   # wc    (per layer)
                pl.BlockSpec((1, 1, hp), lambda l, a: (l, 0, 0)),    # bc    (per layer)
                pl.BlockSpec((hp, op), lambda l, a: (0, 0)),         # w_post (resident)
                pl.BlockSpec((1, op), lambda l, a: (0, 0)),          # b_post
            ],
            out_specs=pl.BlockSpec((np_, op), lambda l, a: (0, 0)),
            scratch_shapes=[pltpu.VMEM((np_, hp), jnp.float32)],     # hidden state
        )

        out_p = pl.pallas_call(
            kernel,
            out_shape=jax.ShapeDtypeStruct((np_, op), jnp.float32),
            grid_spec=grid_spec,
            compiler_params=pltpu.CompilerParams(
                dimension_semantics=("arbitrary",),   # layers are sequential
                vmem_limit_bytes=48 * 1024 * 1024,    # headroom on 64 MiB v7x
            ),
        )(alphas_sm, x_p, adj_p, self.w_pre, self.b_pre,
          self.wc, self.bc, self.w_post, self.b_post)

        return out_p[:n, :self.output_dim]

    # ---------------- pure-JAX reference (eval semantics) ----------------
    def reference(self, x, edge_index):
        n = x.shape[0]
        adj = build_norm_adj(edge_index, n)
        h = x @ self.w_pre[:self.input_dim, :self.hidden_dim] + \
            self.b_pre[0, :self.hidden_dim]
        alphas_sm = jax.nn.softmax(self.alphas, axis=-1)
        for l in range(self.num_layers):
            a = alphas_sm[l]
            wc = self.wc_f32[l, :self.hidden_dim, :self.hidden_dim]
            conv = adj @ (h @ wc) + self.bc[l, 0, :self.hidden_dim]
            mu = jnp.mean(h, axis=-1, keepdims=True)
            var = jnp.mean((h - mu) ** 2, axis=-1, keepdims=True)
            ln = (h - mu) * jax.lax.rsqrt(var + 1e-5)
            act = jnp.maximum(h * a[2], 0.0)
            h = a[0] * conv + a[1] * ln + act
        return h @ self.w_post[:self.hidden_dim, :self.output_dim] + \
            self.b_post[0, :self.output_dim]


if __name__ == "__main__":
    key = jax.random.PRNGKey(0)
    k_x, k_e, k_p = jax.random.split(key, 3)

    num_nodes = 8
    num_edges = 16
    input_dim = 16
    hidden_dim = 32
    output_dim = 8
    num_layers = 2

    x = jax.random.normal(k_x, (num_nodes, input_dim), jnp.float32)
    edge_index = jax.random.randint(k_e, (2, num_edges), 0, num_nodes, jnp.int32)

    net = CoupledSuperNetPallas(input_dim, hidden_dim, output_dim, num_layers, k_p)
    out = net(x, edge_index)
    out = jax.block_until_ready(out)

    assert out.shape == (num_nodes, output_dim)
    assert jnp.all(jnp.isfinite(out))

    # correctness vs. pure-JAX reference (loose tol: conv path runs bf16 on MXU)
    ref = jax.block_until_ready(net.reference(x, edge_index))
    assert jnp.allclose(out, ref, rtol=5e-2, atol=5e-2), \
        f"max abs err {float(jnp.max(jnp.abs(out - ref)))}"

    print("KERNEL_OK")
</pallas_src>

<mosaic_0001>
module attributes {stable_mosaic.version = 11 : i64} {
  func.func @_supernet_kernel(%arg0: i32, %arg1: memref<2x3xf32, #tpu.memory_space<smem>>, %arg2: memref<16x128xf32, #tpu.memory_space<vmem>>, %arg3: memref<16x16xbf16, #tpu.memory_space<vmem>>, %arg4: memref<128x128xf32, #tpu.memory_space<vmem>>, %arg5: memref<1x128xf32, #tpu.memory_space<vmem>>, %arg6: memref<1x128x128xbf16, #tpu.memory_space<vmem>>, %arg7: memref<1x1x128xf32, #tpu.memory_space<vmem>>, %arg8: memref<128x128xf32, #tpu.memory_space<vmem>>, %arg9: memref<1x128xf32, #tpu.memory_space<vmem>>, %arg10: memref<16x128xf32, #tpu.memory_space<vmem>>, %arg11: memref<16x128xf32, #tpu.memory_space<vmem>>) attributes {dimension_semantics = [#tpu.dimension_semantics<arbitrary>], iteration_bounds = array<i64: 2>, scalar_prefetch = 1 : i64, scratch_operands = 1 : i64, tpu.core_type = #tpu.core_type<tc>, window_params = [{pipeline_mode = #tpu.pipeline_mode<synchronous>, transform_indices = @transform_0, window_bounds = array<i64: 16, 128>}, {pipeline_mode = #tpu.pipeline_mode<synchronous>, transform_indices = @transform_1, window_bounds = array<i64: 16, 16>}, {pipeline_mode = #tpu.pipeline_mode<synchronous>, transform_indices = @transform_2, window_bounds = array<i64: 128, 128>}, {pipeline_mode = #tpu.pipeline_mode<synchronous>, transform_indices = @transform_3, window_bounds = array<i64: 1, 128>}, {transform_indices = @transform_4, window_bounds = array<i64: 1, 128, 128>}, {transform_indices = @transform_5, window_bounds = array<i64: 1, 1, 128>}, {pipeline_mode = #tpu.pipeline_mode<synchronous>, transform_indices = @transform_6, window_bounds = array<i64: 128, 128>}, {pipeline_mode = #tpu.pipeline_mode<synchronous>, transform_indices = @transform_7, window_bounds = array<i64: 1, 128>}, {pipeline_mode = #tpu.pipeline_mode<synchronous>, transform_indices = @transform_8, window_bounds = array<i64: 16, 128>}]} {
    %c0_i32 = arith.constant 0 : i32
    %0 = arith.cmpi eq, %arg0, %c0_i32 : i32
    %1 = arith.extui %0 : i1 to i32
    %c0_i32_0 = arith.constant 0 : i32
    %2 = arith.cmpi ne, %1, %c0_i32_0 : i32
    scf.if %2 {
      %c0_23 = arith.constant 0 : index
      %c0_24 = arith.constant 0 : index
      %60 = vector.load %arg2[%c0_23, %c0_24] : memref<16x128xf32, #tpu.memory_space<vmem>>, vector<16x128xf32>
      %c0_25 = arith.constant 0 : index
      %c0_26 = arith.constant 0 : index
      %61 = vector.load %arg4[%c0_25, %c0_26] : memref<128x128xf32, #tpu.memory_space<vmem>>, vector<128x128xf32>
      %cst_27 = arith.constant dense<0.000000e+00> : vector<16x128xf32>
      %62 = tpu.matmul %60, %61, %cst_27 {dimension_numbers = #tpu.dot_dimension_numbers<[1], [0], [0], [1], [0, 0, 1, 1], [], []>} : vector<16x128xf32>, vector<128x128xf32>, vector<16x128xf32> -> vector<16x128xf32>
      %c0_28 = arith.constant 0 : index
      %c0_29 = arith.constant 0 : index
      %63 = vector.load %arg5[%c0_28, %c0_29] : memref<1x128xf32, #tpu.memory_space<vmem>>, vector<1x128xf32>
      %64 = vector.broadcast %63 : vector<1x128xf32> to vector<16x128xf32>
      %65 = arith.addf %62, %64 : vector<16x128xf32>
      %c0_30 = arith.constant 0 : index
      %c0_31 = arith.constant 0 : index
      %66 = vector.load %arg11[%c0_30, %c0_31] : memref<16x128xf32, #tpu.memory_space<vmem>>, vector<16x128xf32>
      tpu.vector_store %arg11[%c0_30, %c0_31], %65 {strides = array<i32>} : memref<16x128xf32, #tpu.memory_space<vmem>>, vector<16x128xf32>,
    } else {
    }
    %c0 = arith.constant 0 : index
    %c0_1 = arith.constant 0 : index
    %3 = vector.load %arg11[%c0, %c0_1] : memref<16x128xf32, #tpu.memory_space<vmem>>, vector<16x128xf32>
    %4 = arith.index_cast %arg0 : i32 to index
    %c0_2 = arith.constant 0 : index
    %5 = memref.load %arg1[%4, %c0_2] : memref<2x3xf32, #tpu.memory_space<smem>>
    %6 = arith.index_cast %arg0 : i32 to index
    %c1 = arith.constant 1 : index
    %7 = memref.load %arg1[%6, %c1] : memref<2x3xf32, #tpu.memory_space<smem>>
    %8 = arith.index_cast %arg0 : i32 to index
    %c2 = arith.constant 2 : index
    %9 = memref.load %arg1[%8, %c2] : memref<2x3xf32, #tpu.memory_space<smem>>
    %10 = arith.truncf %3 : vector<16x128xf32> to vector<16x128xbf16>
    %c0_3 = arith.constant 0 : index
    %c0_4 = arith.constant 0 : index
    %c0_5 = arith.constant 0 : index
    %11 = vector.load %arg6[%c0_3, %c0_4, %c0_5] : memref<1x128x128xbf16, #tpu.memory_space<vmem>>, vector<1x128x128xbf16>
    %12 = vector.shape_cast %11 : vector<1x128x128xbf16> to vector<128x128xbf16>
    %cst = arith.constant dense<0.000000e+00> : vector<16x128xf32>
    %13 = tpu.matmul %10, %12, %cst {dimension_numbers = #tpu.dot_dimension_numbers<[1], [0], [0], [1], [0, 0, 1, 1], [], []>} : vector<16x128xbf16>, vector<128x128xbf16>, vector<16x128xf32> -> vector<16x128xf32>
    %c0_6 = arith.constant 0 : index
    %c0_7 = arith.constant 0 : index
    %14 = vector.load %arg3[%c0_6, %c0_7] : memref<16x16xbf16, #tpu.memory_space<vmem>>, vector<16x16xbf16>
    %15 = arith.truncf %13 : vector<16x128xf32> to vector<16x128xbf16>
    %cst_8 = arith.constant dense<0.000000e+00> : vector<16x128xf32>
    %16 = tpu.matmul %14, %15, %cst_8 {dimension_numbers = #tpu.dot_dimension_numbers<[1], [0], [0], [1], [0, 0, 1, 1], [], []>} : vector<16x16xbf16>, vector<16x128xbf16>, vector<16x128xf32> -> vector<16x128xf32>
    %c0_9 = arith.constant 0 : index
    %c0_10 = arith.constant 0 : index
    %c0_11 = arith.constant 0 : index
    %17 = vector.load %arg7[%c0_9, %c0_10, %c0_11] : memref<1x1x128xf32, #tpu.memory_space<vmem>>, vector<1x1x128xf32>
    %18 = vector.shape_cast %17 : vector<1x1x128xf32> to vector<1x128xf32>
    %19 = vector.broadcast %18 : vector<1x128xf32> to vector<16x128xf32>
    %20 = arith.addf %16, %19 : vector<16x128xf32>
    %cst_12 = arith.constant dense<0.000000e+00> : vector<16xf32>
    %21 = vector.multi_reduction <add>, %3, %cst_12 [1] : vector<16x128xf32> to vector<16xf32>
    %22 = vector.shape_cast %21 : vector<16xf32> to vector<16x1xf32>
    %23 = arith.mulf %3, %3 : vector<16x128xf32>
    %cst_13 = arith.constant dense<0.000000e+00> : vector<16xf32>
    %24 = vector.multi_reduction <add>, %23, %cst_13 [1] : vector<16x128xf32> to vector<16xf32>
    %25 = vector.shape_cast %24 : vector<16xf32> to vector<16x1xf32>
    %cst_14 = arith.constant 3.125000e-02 : f32
    %26 = vector.broadcast %cst_14 : f32 to vector<16x1xf32>
    %27 = arith.mulf %22, %26 : vector<16x1xf32>
    %cst_15 = arith.constant 3.125000e-02 : f32
    %28 = vector.broadcast %cst_15 : f32 to vector<16x1xf32>
    %29 = arith.mulf %25, %28 : vector<16x1xf32>
    %30 = arith.mulf %27, %27 : vector<16x1xf32>
    %31 = arith.subf %29, %30 : vector<16x1xf32>
    %cst_16 = arith.constant 0.000000e+00 : f32
    %32 = vector.broadcast %cst_16 : f32 to vector<16x1xf32>
    %33 = arith.maximumf %31, %32 : vector<16x1xf32>
    %cst_17 = arith.constant 9.99999974E-6 : f32
    %34 = vector.broadcast %cst_17 : f32 to vector<16x1xf32>
    %35 = arith.addf %33, %34 : vector<16x1xf32>
    %36 = math.rsqrt %35 : vector<16x1xf32>
    %37 = vector.broadcast %7 : f32 to vector<16x1xf32>
    %38 = arith.mulf %37, %36 : vector<16x1xf32>
    %39 = tpu.iota {dimensions = array<i32: 1>} : vector<16x128xi32>
    %c32_i32 = arith.constant 32 : i32
    %40 = vector.broadcast %c32_i32 : i32 to vector<16x128xi32>
    %41 = arith.cmpi slt, %39, %40 : vector<16x128xi32>
    %42 = vector.broadcast %27 : vector<16x1xf32> to vector<16x128xf32>
    %43 = arith.subf %3, %42 : vector<16x128xf32>
    %44 = vector.broadcast %38 : vector<16x1xf32> to vector<16x128xf32>
    %45 = arith.mulf %43, %44 : vector<16x128xf32>
    %cst_18 = arith.constant 0.000000e+00 : f32
    %46 = vector.broadcast %cst_18 : f32 to vector<16x128xf32>
    %47 = arith.select %41, %45, %46 : vector<16x128xi1>, vector<16x128xf32>
    %48 = vector.broadcast %5 : f32 to vector<16x128xf32>
    %49 = arith.mulf %48, %20 : vector<16x128xf32>
    %50 = arith.addf %49, %47 : vector<16x128xf32>
    %cst_19 = arith.constant 0.000000e+00 : f32
    %51 = vector.broadcast %cst_19 : f32 to vector<16x128xf32>
    %52 = arith.maximumf %3, %51 : vector<16x128xf32>
    %53 = vector.broadcast %9 : f32 to vector<16x128xf32>
    %54 = arith.mulf %53, %52 : vector<16x128xf32>
    %55 = arith.addf %50, %54 : vector<16x128xf32>
    %c0_20 = arith.constant 0 : index
    %c0_21 = arith.constant 0 : index
    %56 = vector.load %arg11[%c0_20, %c0_21] : memref<16x128xf32, #tpu.memory_space<vmem>>, vector<16x128xf32>
    tpu.vector_store %arg11[%c0_20, %c0_21], %55 {strides = array<i32>} : memref<16x128xf32, #tpu.memory_space<vmem>>, vector<16x128xf32>,
    %c1_i32 = arith.constant 1 : i32
    %57 = arith.cmpi eq, %arg0, %c1_i32 : i32
    %58 = arith.extui %57 : i1 to i32
    %c0_i32_22 = arith.constant 0 : i32
    %59 = arith.cmpi ne, %58, %c0_i32_22 : i32
    scf.if %59 {
      %c0_23 = arith.constant 0 : index
      %c0_24 = arith.constant 0 : index
      %60 = vector.load %arg8[%c0_23, %c0_24] : memref<128x128xf32, #tpu.memory_space<vmem>>, vector<128x128xf32>
      %cst_25 = arith.constant dense<0.000000e+00> : vector<16x128xf32>
      %61 = tpu.matmul %55, %60, %cst_25 {dimension_numbers = #tpu.dot_dimension_numbers<[1], [0], [0], [1], [0, 0, 1, 1], [], []>} : vector<16x128xf32>, vector<128x128xf32>, vector<16x128xf32> -> vector<16x128xf32>
      %c0_26 = arith.constant 0 : index
      %c0_27 = arith.constant 0 : index
      %62 = vector.load %arg9[%c0_26, %c0_27] : memref<1x128xf32, #tpu.memory_space<vmem>>, vector<1x128xf32>
      %63 = vector.broadcast %62 : vector<1x128xf32> to vector<16x128xf32>
      %64 = arith.addf %61, %63 : vector<16x128xf32>
      %c0_28 = arith.constant 0 : index
      %c0_29 = arith.constant 0 : index
      %65 = vector.load %arg10[%c0_28, %c0_29] : memref<16x128xf32, #tpu.memory_space<vmem>>, vector<16x128xf32>
      tpu.vector_store %arg10[%c0_28, %c0_29], %64 {strides = array<i32>} : memref<16x128xf32, #tpu.memory_space<vmem>>, vector<16x128xf32>,
    } else {
    }
    return
  }
  func.func @transform_0(%arg0: i32, %arg1: memref<2x3xf32, #tpu.memory_space<smem>>) -> (i32, i32) {
    %c0_i32 = arith.constant 0 : i32
    %c0_i32_0 = arith.constant 0 : i32
    %c0_i32_1 = arith.constant 0 : i32
    return %c0_i32, %c0_i32_0 : i32, i32
  }
  func.func @transform_1(%arg0: i32, %arg1: memref<2x3xf32, #tpu.memory_space<smem>>) -> (i32, i32) {
    %c0_i32 = arith.constant 0 : i32
    %c0_i32_0 = arith.constant 0 : i32
    %c0_i32_1 = arith.constant 0 : i32
    return %c0_i32, %c0_i32_0 : i32, i32
  }
  func.func @transform_2(%arg0: i32, %arg1: memref<2x3xf32, #tpu.memory_space<smem>>) -> (i32, i32) {
    %c0_i32 = arith.constant 0 : i32
    %c0_i32_0 = arith.constant 0 : i32
    %c0_i32_1 = arith.constant 0 : i32
    return %c0_i32, %c0_i32_0 : i32, i32
  }
  func.func @transform_3(%arg0: i32, %arg1: memref<2x3xf32, #tpu.memory_space<smem>>) -> (i32, i32) {
    %c0_i32 = arith.constant 0 : i32
    %c0_i32_0 = arith.constant 0 : i32
    %c0_i32_1 = arith.constant 0 : i32
    return %c0_i32, %c0_i32_0 : i32, i32
  }
  func.func @transform_4(%arg0: i32, %arg1: memref<2x3xf32, #tpu.memory_space<smem>>) -> (i32, i32, i32) {
    %c0_i32 = arith.constant 0 : i32
    %c0_i32_0 = arith.constant 0 : i32
    %c0_i32_1 = arith.constant 0 : i32
    return %arg0, %c0_i32, %c0_i32_0 : i32, i32, i32
  }
  func.func @transform_5(%arg0: i32, %arg1: memref<2x3xf32, #tpu.memory_space<smem>>) -> (i32, i32, i32) {
    %c0_i32 = arith.constant 0 : i32
    %c0_i32_0 = arith.constant 0 : i32
    %c0_i32_1 = arith.constant 0 : i32
    return %arg0, %c0_i32, %c0_i32_0 : i32, i32, i32
  }
  func.func @transform_6(%arg0: i32, %arg1: memref<2x3xf32, #tpu.memory_space<smem>>) -> (i32, i32) {
    %c0_i32 = arith.constant 0 : i32
    %c0_i32_0 = arith.constant 0 : i32
    %c0_i32_1 = arith.constant 0 : i32
    return %c0_i32, %c0_i32_0 : i32, i32
  }
  func.func @transform_7(%arg0: i32, %arg1: memref<2x3xf32, #tpu.memory_space<smem>>) -> (i32, i32) {
    %c0_i32 = arith.constant 0 : i32
    %c0_i32_0 = arith.constant 0 : i32
    %c0_i32_1 = arith.constant 0 : i32
    return %c0_i32, %c0_i32_0 : i32, i32
  }
  func.func @transform_8(%arg0: i32, %arg1: memref<2x3xf32, #tpu.memory_space<smem>>) -> (i32, i32) {
    %c0_i32 = arith.constant 0 : i32
    %c0_i32_0 = arith.constant 0 : i32
    %c0_i32_1 = arith.constant 0 : i32
    return %c0_i32, %c0_i32_0 : i32, i32
  }
}

</mosaic_0001>

<bundles_post_ra>
// kernel: tpu_custom_call.1
= control target key start
LH: loop header
LB: loop body
LE: loop exit
PB: predicated region body
PF: predicated region fallthrough
CT: control target
= control target key end

     0   :  { %s1439_s30 = smov [#allocation4]   ;;  %s1733_s0 = inlined_call_operand.hbm [shape: f32[2,3], index: 0, kind: input, shape index: {}]   ;;  %s1734_s1 = inlined_call_operand.hbm [shape: f32[16,128], index: 1, kind: input, shape index: {}]   ;;  %s1735_s2 = inlined_call_operand.hbm [shape: bf16[16,16], index: 2, kind: input, shape index: {}]   ;;  %s1736_s3 = inlined_call_operand.hbm [shape: f32[128,128], index: 3, kind: input, shape index: {}]   ;;  %s1737_s4 = inlined_call_operand.vmem [shape: f32[1,128], index: 4, kind: input, shape index: {}]   ;;  %s1738_s5 = inlined_call_operand.hbm [shape: bf16[2,128,128], index: 5, kind: input, shape index: {}]   ;;  %s1739_s6 = inlined_call_operand.vmem [shape: f32[2,1,128], index: 6, kind: input, shape index: {}]   ;;  %s1740_s7 = inlined_call_operand.hbm [shape: f32[128,128], index: 7, kind: input, shape index: {}]   ;;  %s1741_s8 = inlined_call_operand.vmem [shape: f32[1,128], index: 8, kind: input, shape index: {}]   ;;  %s1742_s9 = inlined_call_operand.hbm [shape: f32[16,128], index: 9, kind: output, shape index: {}]  }
   0x1   :  { %15 = dma.hbm_to_smem %s1733_s0, 32, %s1439_s30, [#allocation3] }
   0x2   :  { %1401 = dma.done.wait [#allocation3], 32 }
   0x3   :  { %1402 = vsyncadd [#allocation3], 4294967264 }
   0x4   :  { %17 = sfence }
   0x5   :  { %18 = vsyncpa [#allocation6], 0 }
   0x6   :  { %19 = vsyncpa [#allocation9], 0 }
   0x7   :  { %20 = vsyncpa [#allocation12], 0 }
   0x8   :  { %22 = vsyncpa [#allocation12 + $0x1], 0 }
   0x9   :  { %23 = vsyncpa [#allocation7], 0  ;;  %s1507_s12 = smov 0   ;;  %s1509_s13 = smov 0  }
   0xa   :  { %s1511_s14 = smov 0   ;;  %s1513_s15 = smov 0  }
   0xb LB: > { %s1526_s0 = sadd.s32 4294967295, %s1437_s15   ;;  %p133_p0 = scmp.ne.s32.totalorder %s1429_s13, %s1425_s12  ;;  %s1437_s15 = sphi %s1513_s15, %s1762_s15   ;;  %s1433_s14 = sphi %s1511_s14, %s1761_s14   ;;  %s1429_s13 = sphi %s1509_s13, %s1760_s13   ;;  %s1425_s12 = sphi %s1507_s12, %s1759_s12  }
   0xc   : > { %p1743_p1 = scmp.eq.s32.totalorder %s1526_s0, 0  ;;  %p933_p2 = scmp.ge.s32.totalorder %s1437_s15, 1 }
   0xd   : > { %p233_p3 = scmp.lt.s32.totalorder %s1437_s15, 3  ;;  %s1440_s18 = smov [#allocation8]  }
   0xe   : > { %p1535_p5 = por %p1743_p1, %p133_p0  ;;  %s258_s19 = sshll.u32 %s1440_s18, 4  ;;  %s259_s19 = int_to_ptr.vmem [resolvable:$true] %s258_s19 }
   0xf   : > { %p1539_p6 = pnand %p933_p2, %p233_p3  ;;  %s1441_s21 = smov [#allocation13]  }
  0x10   : > { %s1746_s16 = scalar_select %p1535_p5, 1, 0 }
  0x11   : > { %s1747_s17 = scalar_select %p1539_p6, 1, 0 }
  0x12   : > { %p1134_p7 = pneg %p1539_p6  ;;  %s287_s22 = sshll.u32 %s1441_s21, 4  ;;  %s288_s22 = int_to_ptr.vmem [resolvable:$true] %s287_s22 }
  0x13   : > { %s1240_s23 = scalar_lea.vmem %s259_s19, 128  ;;  %p1248_p13 = scmp.lt.s32.totalorder %s259_s19, %s259_s19 }
  0x14   : > { %p1547_p8 = pnand %p1134_p7, %p1743_p1  ;;  %p1241_p10 = scmp.ne.s32.totalorder %s259_s19, %s1240_s23 }
  0x15   : > { %p1249_p0 = scmp.lt.s32.totalorder %s1240_s23, %s1240_s23 }
  0x16   : > { %p1231_p9 = pneg %p1547_p8 }
  0x17   : > { %p1250_p2 = por %p1249_p0, %p1248_p13 }
  0x18   : > { %p1243_p11 = pnand %p1241_p10, %p1231_p9 }
  0x1a   : > { %p1244_p12 = pneg %p1243_p11 }
  0x1c   : > { %p1251_p3 = pnand %p1250_p2, %p1244_p12 }
  0x1e   : > { %1254 = shalt.err (!%p1251_p3)
}
  0x1f   : > { %s1442_s24 = smov 64   ;;  %s1443_s25 = smov 4  }
  0x20   : > { %1140 = dma.hbm_to_vmem [thread:$0]  (!%p1547_p8), %s1735_s2, 128, %s259_s19, [#allocation9], %s1442_s24, %s1442_s24, %s1443_s25  }
  0x21   : > { %s1444_s28 = smov [#allocation5]   ;;  %s1266_s30 = scalar_lea.vmem %s288_s22, 2048 }
  0x22   : > { %s245_s29 = sshll.u32 %s1444_s28, 4  ;;  %p1267_p7 = scmp.ne.s32.totalorder %s288_s22, %s1266_s30  ;;  %s246_s29 = int_to_ptr.vmem [resolvable:$true] %s245_s29 }
  0x23   : > { %p1274_p12 = scmp.lt.s32.totalorder %s288_s22, %s288_s22  ;;  %p1275_p13 = scmp.lt.s32.totalorder %s1266_s30, %s1266_s30 }
  0x24   : > { %p1269_p10 = pnand %p1267_p7, %p1231_p9 }
  0x25   : > { %p1276_p0 = por %p1275_p13, %p1274_p12 }
  0x26   : > { %p1270_p11 = pneg %p1269_p10 }
  0x28   : > { %p1277_p2 = pnand %p1276_p0, %p1270_p11 }
  0x2a   : > { %1280 = shalt.err (!%p1277_p2)
}
  0x2b   : > { %s1445_s10 = smov 128   ;;  %s1446_s11 = smov 8  }
  0x2c   : > { %1146 = dma.hbm_to_vmem [thread:$0]  (!%p1547_p8), %s1740_s7, 2048, %s288_s22, [#allocation12], %s1445_s10, %s1445_s10, %s1446_s11  }
  0x2d   : > { %s1292_s19 = scalar_lea.vmem %s246_s29, 256  ;;  %p1300_p4 = scmp.lt.s32.totalorder %s246_s29, %s246_s29 }
  0x2e   : > { %p1293_p3 = scmp.ne.s32.totalorder %s246_s29, %s1292_s19  ;;  %p1301_p12 = scmp.lt.s32.totalorder %s1292_s19, %s1292_s19 }
  0x30   : > { %p1295_p7 = pnand %p1293_p3, %p1231_p9  ;;  %p1302_p11 = por %p1301_p12, %p1300_p4 }
  0x32   : > { %p1296_p10 = pneg %p1295_p7 }
  0x34   : > { %p1303_p13 = pnand %p1302_p11, %p1296_p10 }
  0x36   : > { %1306 = shalt.err (!%p1303_p13)
}
  0x37   : > { %1137 = dma.hbm_to_vmem [thread:$0]  (!%p1547_p8), %s1734_s1, 256, %s246_s29, [#allocation6], %s1445_s10, %s1445_s10, %s1446_s11  }
  0x38   : > { %s1447_s22 = smov [#allocation10]  }
  0x39   : > { %s271_s26 = sshll.u32 %s1447_s22, 4  ;;  %s272_s26 = int_to_ptr.vmem [resolvable:$true] %s271_s26 }
  0x3a   : > { %s1318_s27 = scalar_lea.vmem %s272_s26, 2048  ;;  %p1326_p7 = scmp.lt.s32.totalorder %s272_s26, %s272_s26 }
  0x3b   : > { %p1319_p0 = scmp.ne.s32.totalorder %s272_s26, %s1318_s27  ;;  %p1327_p4 = scmp.lt.s32.totalorder %s1318_s27, %s1318_s27 }
  0x3d   : > { %p1321_p2 = pnand %p1319_p0, %p1231_p9  ;;  %p1328_p10 = por %p1327_p4, %p1326_p7 }
  0x3f   : > { %p1322_p3 = pneg %p1321_p2 }
  0x41   : > { %p1329_p12 = pnand %p1328_p10, %p1322_p3 }
  0x43   : > { %1332 = shalt.err (!%p1329_p12)
}
  0x44   : > { %1143 = dma.hbm_to_vmem [thread:$0]  (!%p1547_p8), %s1736_s3, 2048, %s272_s26, [#allocation9], %s1445_s10, %s1445_s10, %s1446_s11  }
  0x45   : > { %s1589_s29 = sadd.s32 1, %s1437_s15   ;;  %s120_s12 = sadd.s32 1, %s1433_s14 }
  0x46   : > { %s117_s20 = ssub.s32 %s1437_s15, %s1589_s29  ;;  %p127_p9 = scmp.ne.s32.totalorder %s1433_s14, %s1429_s13 }
  0x47   : > { %p118_p11 = scmp.eq.s32.totalorder %s117_s20, 0  ;;  %p128_p13 = scmp.eq.s32.totalorder %s1437_s15, 0 }
  0x48   : > { %p1155_p0 = scmp.lt.s32.totalorder %s1437_s15, 2  ;;  %s304_s18 = sand.u32 1, %s1437_s15  }
  0x49   : > { %s1600_s19 = scalar_select %p118_p11, %s1433_s14, %s120_s12  }
  0x4a   : > { %p129_p2 = por %p128_p13, %p127_p9  ;;  %s306_s21 = sand.u32 1, %s1433_s14  }
  0x4b   : > { %s968_s23 = sshll.u32 %s1437_s15, 10  ;;  %s939_s22 = sshll.u32 %s306_s21, 6 }
  0x4c   : > { %s1607_s10 = scalar_lea.hbm %s1738_s5, %s968_s23  ;;  %p1609_p8 = pnand %p1155_p0, %p129_p2 }
  0x4d   : > { %s308_s26 = scalar_lea.vmem [#allocation11], %s939_s22  ;;  %s1615_s12 = scalar_lea.sflag [#allocation12], %s304_s18 }
  0x4e   : > { %s315_s30 = sshll.u32 %s308_s26, 4  ;;  %s1333_s15 = scalar_lea.hbm %s1607_s10, 1024  ;;  %s1613_s30 = int_to_ptr.vmem [resolvable:$true] %s315_s30 }
  0x4f   : > { %p1334_p3 = scmp.ne.s32.totalorder %s1607_s10, %s1333_s15  ;;  %p1335_p7 = pneg %p1609_p8 }
  0x50   : > { %s1338_s23 = scalar_lea.hbm %s1738_s5, 2048  ;;  %p1339_p12 = scmp.lt.s32.totalorder %s1607_s10, %s1738_s5 }
  0x51   : > { %p1336_p4 = pnand %p1335_p7, %p1334_p3  ;;  %p1340_p9 = scmp.lt.s32.totalorder %s1338_s23, %s1333_s15 }
  0x53   : > { %p1337_p10 = pneg %p1336_p4  ;;  %p1341_p11 = por %p1340_p9, %p1339_p12 }
  0x55   : > { %p1342_p13 = pnand %p1341_p11, %p1337_p10 }
  0x57   : > { %1345 = shalt.err (!%p1342_p13)
}
  0x58   : > { %s1346_s18 = scalar_lea.vmem %s1613_s30, 1024  ;;  %s1448_s22 = smov [#allocation11]  }
  0x59   : > { %p1347_p0 = scmp.ne.s32.totalorder %s1613_s30, %s1346_s18  ;;  %s1351_s26 = sshll.u32 %s1448_s22, 4  ;;  %s1352_s26 = int_to_ptr.vmem [resolvable:$false] %s1351_s26 }
  0x5a   : > { %s1353_s20 = scalar_lea.vmem %s1352_s26, 2048  ;;  %p1354_p4 = scmp.lt.s32.totalorder %s1613_s30, %s1352_s26 }
  0x5b   : > { %p1349_p2 = pnand %p1347_p0, %p1335_p7  ;;  %p1355_p1 = scmp.lt.s32.totalorder %s1353_s20, %s1346_s18 }
  0x5d   : > { %p1350_p3 = pneg %p1349_p2  ;;  %p1356_p5 = por %p1355_p1, %p1354_p4 }
  0x5f   : > { %p1357_p6 = pnand %p1356_p5, %p1350_p3 }
  0x61   : > { %1360 = shalt.err (!%p1357_p6)
}
  0x62   : > { %1150 = dma.hbm_to_vmem [thread:$0]  (!%p1609_p8), %s1607_s10, 1024, %s1613_s30, %s1615_s12, %s1442_s24, %s1442_s24, %s1443_s25  }
  0x63   : > { %p1750_p7 = scmp.ne.s32.totalorder %s1747_s17, 0 }
  0x64   : > { %p1751_p10 = scmp.eq.s32.totalorder (!%p1750_p7), %s1526_s0, 0 }
  0x65   : > { %333 = sbr.rel (%p1750_p7) target bundleno = 1045 (0x415), region = 52 }
  0x6a   : > { %1404 = dma.done.wait (%p1751_p10), [#allocation6], 256   ;;  %p1752_p12 = pmov %p1751_p10 }
  0x6b   : > { %p1753_p1 = pmov %p1751_p10 }
  0x6c   : > { %1406 = vsyncadd (%p1752_p12), [#allocation6], 4294967040 }
  0x6d   : > { %1408 = dma.done.wait (%p1753_p1), [#allocation9], 2176   ;;  %p1754_p5 = pmov %p1753_p1 }
  0x6e   : > { %s347_s11 = sand.u32 1, %s1526_s0   ;;  %s349_s24 = sand.u32 1, %s1429_s13  }
  0x6f   : > { %1410 = vsyncadd (%p1754_p5), [#allocation9], 4294965120  ;;  %s946_s25 = sshll.u32 %s349_s24, 6  ;;  %s348_s17 = scalar_lea.sflag [#allocation12], %s347_s11 }
  0x70   : > { %s1651_s10 = scalar_lea.vmem [#allocation11], %s946_s25  ;;  %p1755_p6 = scmp.ne.s32.totalorder %s1746_s16, 0 }
  0x72   : > { %1412 = dma.done.wait (%p1755_p6), %s348_s17, 1024  }
  0x73   : > { %1414 = vsyncadd (%p1755_p6), %s348_s17, 4294966272  ;;  %p1756_p8 = pmov %p1753_p1 }
  0x74   : > { %p1757_p9 = pmov %p1753_p1 }
  0x75   : > { %1416 = dma.done.wait (%p1756_p8), [#allocation12], 2048  }
  0x76   : > { %1418 = vsyncadd (%p1757_p9), [#allocation12], 4294965248  ;;  %p386_p11 = scmp.lt.s32.totalorder %s1526_s0, 1  ;;  %p1758_p13 = scmp.ne.s32.totalorder %s1526_s0, 0 }
  0x78   : > { %s1663_s30 = scalar_select %p386_p11, %s1526_s0, 1 }
  0x79   : > { %393 = sbr.rel (%p1758_p13) target bundleno = 357 (0x165), region = 76 }
  0x7a   : > { %s388_s21 = scalar_lea.vmem %s1739_s6, %s1663_s30 }
  0x7e   : > { %v411_v0 = vld [vmem:[#allocation10 + $0x78] sm:$0xff]  ;;  %v410_v1 = vld [vmem:[#allocation10 + $0x70] sm:$0xff]  ;;  %v409_v2 = vld [vmem:[#allocation10 + $0x68] sm:$0xff] }
  0x7f   : > { %1016 = vmatprep.subr.mxu0 %v411_v0  ;;  %v408_v3 = vld [vmem:[#allocation10 + $0x60] sm:$0xff]  ;;  %v394_v4 = vld [vmem:[#allocation5] sm:$0xff]  ;;  %v407_v5 = vld [vmem:[#allocation10 + $0x58] sm:$0xff] }
  0x80   : > { %1017 = vmatpush3.msra.mxu0 %v411_v0  ;;  %1048 = vmatprep.mubr.f32.mxu0 %v394_v4  ;;  %v406_v6 = vld [vmem:[#allocation10 + $0x50] sm:$0xff]  ;;  %v405_v7 = vld [vmem:[#allocation10 + $0x48] sm:$0xff]  ;;  %v404_v8 = vld [vmem:[#allocation10 + $0x40] sm:$0xff] }
  0x81   : > { %1018 = vmatprep.subr.mxu0 %v410_v1  ;;  %v403_v9 = vld [vmem:[#allocation10 + $0x38] sm:$0xff]  ;;  %v402_v10 = vld [vmem:[#allocation10 + $0x30] sm:$0xff]  ;;  %v401_v11 = vld [vmem:[#allocation10 + $0x28] sm:$0xff] }
  0x82   : > { %1019 = vmatpush3.msra.mxu0 %v410_v1  ;;  %v400_v12 = vld [vmem:[#allocation10 + $0x20] sm:$0xff]  ;;  %v399_v13 = vld [vmem:[#allocation10 + $0x18] sm:$0xff]  ;;  %v398_v14 = vld [vmem:[#allocation10 + $0x10] sm:$0xff] }
  0x83   : > { %1020 = vmatprep.subr.mxu0 %v409_v2  ;;  %v397_v15 = vld [vmem:[#allocation10 + $0x8] sm:$0xff]  ;;  %v396_v16 = vld [vmem:[#allocation10] sm:$0xff]  ;;  %v395_v17 = vld [vmem:[#allocation5 + $0x8] sm:$0xff] }
  0x84   : > { %1021 = vmatpush3.msra.mxu0 %v409_v2  ;;  %v949_v18 = vld [vmem:[%s1737_s4] ss:$0 sm:$0xff] }
  0x85   : > { %1022 = vmatprep.subr.mxu0 %v408_v3 }
  0x86   : > { %1023 = vmatpush3.msra.mxu0 %v408_v3 }
  0x87   : > { %1024 = vmatprep.subr.mxu0 %v407_v5 }
  0x88   : > { %1025 = vmatpush3.msra.mxu0 %v407_v5 }
  0x89   : > { %1026 = vmatprep.subr.mxu0 %v406_v6 }
  0x8a   : > { %1027 = vmatpush3.msra.mxu0 %v406_v6 }
  0x8b   : > { %1028 = vmatprep.subr.mxu0 %v405_v7 }
  0x8c   : > { %1029 = vmatpush3.msra.mxu0 %v405_v7 }
  0x8d   : > { %1030 = vmatprep.subr.mxu0 %v404_v8 }
  0x8e   : > { %1031 = vmatpush3.msra.mxu0 %v404_v8 }
  0x8f   : > { %1032 = vmatprep.subr.mxu0 %v403_v9 }
  0x90   : > { %1033 = vmatpush3.msra.mxu0 %v403_v9 }
  0x91   : > { %1034 = vmatprep.subr.mxu0 %v402_v10 }
  0x92   : > { %1035 = vmatpush3.msra.mxu0 %v402_v10 }
  0x93   : > { %1036 = vmatprep.subr.mxu0 %v401_v11 }
  0x94   : > { %1037 = vmatpush3.msra.mxu0 %v401_v11 }
  0x95   : > { %1038 = vmatprep.subr.mxu0 %v400_v12 }
  0x96   : > { %1039 = vmatpush3.msra.mxu0 %v400_v12 }
  0x97   : > { %1040 = vmatprep.subr.mxu0 %v399_v13 }
  0x98   : > { %1041 = vmatpush3.msra.mxu0 %v399_v13 }
  0x99   : > { %1042 = vmatprep.subr.mxu0 %v398_v14 }
  0x9a   : > { %1043 = vmatpush3.msra.mxu0 %v398_v14 }
  0x9b   : > { %1044 = vmatprep.subr.mxu0 %v397_v15 }
  0x9c   : > { %1045 = vmatpush3.msra.mxu0 %v397_v15 }
  0x9d   : > { %1046 = vmatprep.subr.mxu0 %v396_v16 }
  0x9e   : > { %1047 = vmatpush3.msra.mxu0 %v396_v16 }
  0x9f   : > { %1049 = vmatmul.mubr.f32.vlgmr.msra.gmra.mxu0 %v395_v17 }
 0x15f   : > { %v1050_v19 = vpop.f32.mrf.mxu0 }
 0x160   : > { %v491_v20 = vadd.f32 %v1050_v19, %v949_v18 }
 0x161   : > { %v485_v21 = vpop.f32.mrf.mxu0 }
 0x162   : > { %495 = vst [vmem:[#allocation2 + $0x8] sm:$0xff] %v491_v20  ;;  %v486_v22 = vadd.f32 %v949_v18, %v485_v21 }
 0x164   : > { %494 = vst [vmem:[#allocation2] sm:$0xff] %v486_v22 }
 0x165 PF: > { %v1208_v23 = vld [vmem:[%s1651_s10 + $0x38] sm:$0xff]   ;;  %v1449_v24 = vmov 0.0   ;;  %v1209_v25 = vld [vmem:[%s1651_s10 + $0x30] sm:$0xff]   ;;  %vm1450_vm0 = vmmov 0   ;;  %v1210_v26 = vld [vmem:[%s1651_s10 + $0x28] sm:$0xff]   ;;  %vm625_vm1 = vcmask 130048   ;;  %v697_v61 = vlaneseq }
 0x166   : > { %1051 = vmatprep.subr.bf16.mxu0 %v1449_v24  ;;  %1071 = vmatprep.subr.bf16.mxu1 %v1449_v24  ;;  %v1211_v28 = vld [vmem:[%s1651_s10 + $0x20] sm:$0xff]   ;;  %v1212_v30 = vld [vmem:[%s1651_s10 + $0x18] sm:$0xff]   ;;  %v1213_v31 = vld [vmem:[%s1651_s10 + $0x10] sm:$0xff]   ;;  %s950_s27 = sshll.u32 %s1526_s0, 7  ;;  %p962_p0 = scmp.ne.s32.totalorder %s1526_s0, 1 }
 0x167   : > { %1052 = vmatpush3.bf16.msra.mxu0 %v1208_v23  ;;  %1067 = vmatprep.mubr.msk.bf16.mxu0 %vm1450_vm0, %v1449_v24  ;;  %v1214_v32 = vld [vmem:[%s1651_s10 + $0x8] sm:$0xff]   ;;  %v1215_v33 = vld [vmem:[%s1651_s10] sm:$0xff]   ;;  %v1216_v42 = vld [vmem:[#allocation8] sm:$0xff]   ;;  %s500_s28 = sadd.s32 1, %s950_s27  ;;  %s502_s22 = sadd.s32 2, %s950_s27  ;;  %v698_v1 = vand.u32 127, %v697_v61 }
 0x168   : > { %1053 = vmatprep.subr.bf16.mxu0 %v1449_v24  ;;  %1073 = vmatprep.mubr.msk.bf16.mxu1 %vm1450_vm0, %v1449_v24  ;;  %s501_s18 = sld [smem:[#allocation4 + %s500_s28]]  ;;  %v959_v2 = vld [vmem:[%s388_s21] ss:$0 sm:$0xff] }
 0x169   : > { %v1681_v29 = vld [vmem:[#allocation2 + $0x8] sm:$0xff]  ;;  %s499_s26 = sld [smem:[#allocation4 + %s950_s27]]  ;;  %vm699_vm2 = vcmp.lt.s32.totalorder %v698_v1, 32 }
 0x16a   : > { %v675_v36 = vmul.f32 %v1681_v29, %v1681_v29  ;;  %s503_s20 = sld [smem:[#allocation4 + %s502_s22]]  ;;  %v712_v14 = vmax.f32 %v1681_v29, 0.0 }
 0x16b   : > { %1054 = vmatpush3.bf16.msra.mxu0 %v1209_v25  ;;  %v1677_v27 = vld [vmem:[#allocation2] sm:$0xff] }
 0x16c   : > { %1055 = vmatprep.subr.bf16.mxu0 %v1449_v24  ;;  %670 = vadd.xlane.f32.xlu0 %v1677_v27  ;;  %v504_v34 = vpack.c.bf16 %v1681_v29, %v1677_v27  ;;  %v674_v35 = vmul.f32 %v1677_v27, %v1677_v27  ;;  %v711_v4 = vmax.f32 %v1677_v27, 0.0 }
 0x16e   : > { %676 = vadd.xlane.f32.xlu1 %v674_v35  ;;  %v694_v60 = vstv %s501_s18 }
 0x16f   : > { %1056 = vmatpush3.bf16.msra.mxu0 %v1210_v26  ;;  %v706_v7 = vstv %s499_s26 }
 0x170   : > { %1057 = vmatprep.subr.bf16.mxu0 %v1449_v24  ;;  %672 = vadd.xlane.f32.xlu0 %v1681_v29  ;;  %v713_v8 = vstv %s503_s20 }
 0x171   : > { %v714_v13 = vmul.f32 %v713_v8, %v711_v4  ;;  %v715_v23 = vmul.f32 %v713_v8, %v712_v14 }
 0x172   : > { %678 = vadd.xlane.f32.xlu1 %v675_v36 }
 0x173   : > { %1058 = vmatpush3.bf16.msra.mxu0 %v1211_v28 }
 0x174   : > { %1059 = vmatprep.subr.bf16.mxu0 %v1449_v24 }
 0x177   : > { %1060 = vmatpush3.bf16.msra.mxu0 %v1212_v30 }
 0x178   : > { %1061 = vmatprep.subr.bf16.mxu0 %v1449_v24 }
 0x17b   : > { %1062 = vmatpush3.bf16.msra.mxu0 %v1213_v31 }
 0x17c   : > { %1063 = vmatprep.subr.bf16.mxu0 %v1449_v24 }
 0x17f   : > { %1064 = vmatpush3.bf16.msra.mxu0 %v1214_v32 }
 0x180   : > { %1065 = vmatprep.subr.bf16.mxu0 %v1449_v24 }
 0x183   : > { %1066 = vmatpush3.bf16.msra.mxu0 %v1215_v33 }
 0x186   : > { %1068 = vmatmul.mubr.bf16.vlgmr.msra.gmra.mxu0 %v504_v34 }
 0x1f5   : > { %v671_v43 = vpop.xlane.xlu0 %670 }
 0x1f6   : > { %v680_v45 = vmul.f32 0.03125, %v671_v43 }
 0x1f7   : > { %v677_v44 = vpop.xlane.xlu1 %676 }
 0x1f8   : > { %v684_v47 = vmul.f32 %v680_v45, %v680_v45  ;;  %v682_v48 = vmul.f32 0.03125, %v677_v44  ;;  %v700_v62 = vsub.f32 %v1677_v27, %v680_v45 }
 0x1f9   : > { %v673_v46 = vpop.xlane.xlu0 %672 }
 0x1fa   : > { %v681_v49 = vmul.f32 0.03125, %v673_v46  ;;  %v686_v51 = vsub.f32 %v682_v48, %v684_v47 }
 0x1fb   : > { %v679_v50 = vpop.xlane.xlu1 %678 }
 0x1fc   : > { %v685_v52 = vmul.f32 %v681_v49, %v681_v49  ;;  %v683_v53 = vmul.f32 0.03125, %v679_v50  ;;  %v688_v54 = vmax.f32 %v686_v51, 0.0  ;;  %v701_v3 = vsub.f32 %v1681_v29, %v681_v49 }
 0x1fe   : > { %v687_v55 = vsub.f32 %v683_v53, %v685_v52  ;;  %v690_v56 = vadd.f32 1e-05, %v688_v54 }
 0x200   : > { %v689_v57 = vmax.f32 %v687_v55, 0.0  ;;  %1217 = vrsqrt.f32 %v690_v56 }
 0x202   : > { %v691_v58 = vadd.f32 1e-05, %v689_v57 }
 0x204   : > { %1219 = vrsqrt.f32 %v691_v58 }
 0x20d   : > { %v1218_v59 = vpop.eup %1217 }
 0x20e   : > { %v695_v63 = vmul.f32 %v1218_v59, %v694_v60 }
 0x210   : > { %v702_v6 = vmul.f32 %v700_v62, %v695_v63 }
 0x211   : > { %v1220_v0 = vpop.eup %1219 }
 0x212   : > { %v696_v9 = vmul.f32 %v1220_v0, %v694_v60  ;;  %v704_v15 = vsel %vm699_vm2, %v702_v6, 0.0 }
 0x214   : > { %v703_v17 = vmul.f32 %v701_v3, %v696_v9 }
 0x216   : > { %v705_v24 = vsel %vm699_vm2, %v703_v17, 0.0 }
 0x246   : > { %v603_v37 = vpop.f32.mrf.mxu0 }
 0x248   : > { %v1069_v38 = vpop.f32.mrf.mxu0 }
 0x24a   : > { %v606_v39 = vpop.f32.mrf.mxu0 }
 0x24b   : > { %v612_v40 = vpack.c.bf16 %v606_v39, %v603_v37 }
 0x24c   : > { %v1070_v41 = vpop.f32.mrf.mxu0 }
 0x24d   : > { %1072 = vmatpush3.bf16.msra.mxu1 %v612_v40 }
 0x250   : > { %1074 = vmatmul.mubr.msk.bf16.vlgmr.msra.gmra.mxu1 %vm625_vm1, %v1216_v42 }
 0x310   : > { %v663_v5 = vpop.f32.mrf.mxu1 }
 0x311   : > { %v664_v10 = vadd.f32 %v959_v2, %v663_v5 }
 0x312   : > { %v1075_v11 = vpop.f32.mrf.mxu1 }
 0x313   : > { %v707_v12 = vmul.f32 %v706_v7, %v664_v10 }
 0x314   : > { %v666_v16 = vpop.f32.mrf.mxu1 }
 0x315   : > { %v709_v18 = vadd.f32 %v707_v12, %v704_v15  ;;  %v667_v19 = vadd.f32 %v959_v2, %v666_v16 }
 0x316   : > { %v1076_v20 = vpop.f32.mrf.mxu1 }
 0x317   : > { %v716_v21 = vadd.f32 %v714_v13, %v709_v18  ;;  %v708_v22 = vmul.f32 %v706_v7, %v667_v19 }
 0x319   : > { %718 = vst [vmem:[#allocation2] sm:$0xff] %v716_v21  ;;  %v710_v25 = vadd.f32 %v708_v22, %v705_v24  ;;  %723 = sbr.rel (%p962_p0) target bundleno = 1029 (0x405), region = 80 }
 0x31b   : > { %v717_v26 = vadd.f32 %v715_v23, %v710_v25 }
 0x31d   : > { %719 = vst [vmem:[#allocation2 + $0x8] sm:$0xff] %v717_v26 }
 0x31e   : > { %v739_v27 = vld [vmem:[#allocation13 + $0x78] sm:$0xff]  ;;  %v738_v28 = vld [vmem:[#allocation13 + $0x70] sm:$0xff]  ;;  %1109 = vmatprep.mubr.f32.mxu0 %v716_v21  ;;  %v737_v29 = vld [vmem:[#allocation13 + $0x68] sm:$0xff] }
 0x31f   : > { %1077 = vmatprep.subr.mxu0 %v739_v27  ;;  %v736_v30 = vld [vmem:[#allocation13 + $0x60] sm:$0xff]  ;;  %v735_v31 = vld [vmem:[#allocation13 + $0x58] sm:$0xff]  ;;  %v734_v32 = vld [vmem:[#allocation13 + $0x50] sm:$0xff] }
 0x320   : > { %1078 = vmatpush3.msra.mxu0 %v739_v27  ;;  %v733_v33 = vld [vmem:[#allocation13 + $0x48] sm:$0xff]  ;;  %v732_v34 = vld [vmem:[#allocation13 + $0x40] sm:$0xff]  ;;  %v731_v35 = vld [vmem:[#allocation13 + $0x38] sm:$0xff] }
 0x321   : > { %1079 = vmatprep.subr.mxu0 %v738_v28  ;;  %v730_v36 = vld [vmem:[#allocation13 + $0x30] sm:$0xff]  ;;  %v729_v37 = vld [vmem:[#allocation13 + $0x28] sm:$0xff]  ;;  %v728_v38 = vld [vmem:[#allocation13 + $0x20] sm:$0xff] }
 0x322   : > { %1080 = vmatpush3.msra.mxu0 %v738_v28  ;;  %v727_v39 = vld [vmem:[#allocation13 + $0x18] sm:$0xff]  ;;  %v726_v40 = vld [vmem:[#allocation13 + $0x10] sm:$0xff]  ;;  %v725_v41 = vld [vmem:[#allocation13 + $0x8] sm:$0xff] }
 0x323   : > { %1081 = vmatprep.subr.mxu0 %v737_v29  ;;  %v724_v42 = vld [vmem:[#allocation13] sm:$0xff]  ;;  %v963_v43 = vld [vmem:[%s1741_s8] ss:$0 sm:$0xff] }
 0x324   : > { %1082 = vmatpush3.msra.mxu0 %v737_v29 }
 0x325   : > { %1083 = vmatprep.subr.mxu0 %v736_v30 }
 0x326   : > { %1084 = vmatpush3.msra.mxu0 %v736_v30 }
 0x327   : > { %1085 = vmatprep.subr.mxu0 %v735_v31 }
 0x328   : > { %1086 = vmatpush3.msra.mxu0 %v735_v31 }
 0x329   : > { %1087 = vmatprep.subr.mxu0 %v734_v32 }
 0x32a   : > { %1088 = vmatpush3.msra.mxu0 %v734_v32 }
 0x32b   : > { %1089 = vmatprep.subr.mxu0 %v733_v33 }
 0x32c   : > { %1090 = vmatpush3.msra.mxu0 %v733_v33 }
 0x32d   : > { %1091 = vmatprep.subr.mxu0 %v732_v34 }
 0x32e   : > { %1092 = vmatpush3.msra.mxu0 %v732_v34 }
 0x32f   : > { %1093 = vmatprep.subr.mxu0 %v731_v35 }
 0x330   : > { %1094 = vmatpush3.msra.mxu0 %v731_v35 }
 0x331   : > { %1095 = vmatprep.subr.mxu0 %v730_v36 }
 0x332   : > { %1096 = vmatpush3.msra.mxu0 %v730_v36 }
 0x333   : > { %1097 = vmatprep.subr.mxu0 %v729_v37 }
 0x334   : > { %1098 = vmatpush3.msra.mxu0 %v729_v37 }
 0x335   : > { %1099 = vmatprep.subr.mxu0 %v728_v38 }
 0x336   : > { %1100 = vmatpush3.msra.mxu0 %v728_v38 }
 0x337   : > { %1101 = vmatprep.subr.mxu0 %v727_v39 }
 0x338   : > { %1102 = vmatpush3.msra.mxu0 %v727_v39 }
 0x339   : > { %1103 = vmatprep.subr.mxu0 %v726_v40 }
 0x33a   : > { %1104 = vmatpush3.msra.mxu0 %v726_v40 }
 0x33b   : > { %1105 = vmatprep.subr.mxu0 %v725_v41 }
 0x33c   : > { %1106 = vmatpush3.msra.mxu0 %v725_v41 }
 0x33d   : > { %1107 = vmatprep.subr.mxu0 %v724_v42 }
 0x33e   : > { %1108 = vmatpush3.msra.mxu0 %v724_v42 }
 0x33f   : > { %1110 = vmatmul.mubr.f32.vlgmr.msra.gmra.mxu0 %v717_v26 }
 0x3ff   : > { %v1111_v44 = vpop.f32.mrf.mxu0 }
 0x400   : > { %v819_v45 = vadd.f32 %v1111_v44, %v963_v43 }
 0x401   : > { %v813_v46 = vpop.f32.mrf.mxu0 }
 0x402   : > { %823 = vst [vmem:[#allocation14 + $0x8] sm:$0xff] %v819_v45  ;;  %v814_v47 = vadd.f32 %v963_v43, %v813_v46 }
 0x404   : > { %822 = vst [vmem:[#allocation14] sm:$0xff] %v814_v47 }
 0x405 PF: > { %p1160_p2 = scmp.eq.s32.totalorder %s1526_s0, 1  ;;  %s1451_s10 = smov [#allocation14]  }
 0x406   : > { %s830_s30 = sshll.u32 %s1451_s10, 4  ;;  %s831_s30 = int_to_ptr.vmem [resolvable:$true] %s830_s30 }
 0x407   : > { %s1361_s12 = scalar_lea.vmem %s831_s30, 256  ;;  %p1368_p10 = scmp.lt.s32.totalorder %s831_s30, %s831_s30 }
 0x408   : > { %p1362_p3 = scmp.ne.s32.totalorder %s831_s30, %s1361_s12  ;;  %p1369_p12 = scmp.lt.s32.totalorder %s1361_s12, %s1361_s12 }
 0x40a   : > { %p1363_p4 = pnand %p1362_p3, %p1160_p2  ;;  %p1370_p1 = por %p1369_p12, %p1368_p10 }
 0x40c   : > { %p1364_p7 = pneg %p1363_p4 }
 0x40e   : > { %p1371_p5 = pnand %p1370_p1, %p1364_p7 }
 0x410   : > { %1374 = shalt.err (!%p1371_p5)
}
 0x411   : > { %s1452_s15 = smov 128   ;;  %s1453_s21 = smov 8  }
 0x412   : > { %1131 = dma.vmem_to_hbm [thread:$0]  (%p1160_p2), %s831_s30, 256, %s1742_s9, [#allocation7], %s1452_s15, %s1452_s15, %s1453_s21  }
 0x413   : > { %1420 = dma.done.wait (%p1160_p2), [#allocation7], 256  }
 0x414   : > { %1422 = vsyncadd (%p1160_p2), [#allocation7], 4294967040 }
 0x415 PF: > { %p26_p6 = scmp.ge.s32.totalorder %s1589_s29, 4   ;;  %s1759_s12 = smov %s1429_s13 }
 0x416   : > { %s1760_s13 = smov %s1433_s14  ;;  %s1761_s14 = smov %s1600_s19 }
 0x417   : > { %s1762_s15 = smov %s1589_s29  ;;  %28 = sbr.rel (!%p26_p6) target bundleno = 11 (0xb), region = 117 }
 0x41c   :  { %846 = vsyncpa [#allocation6], 1 }
 0x41d   :  { %848 = vsyncpa [#allocation6 + $0x1], 1 }
 0x41e   :  { %849 = vsyncpa [#allocation9], 1 }
 0x41f   :  { %850 = vsyncpa [#allocation12], 1 }
 0x420   :  { %852 = vsyncpa [#allocation12 + $0x1], 1 }
 0x421   :  { %853 = vsyncpa [#allocation7], 1 }
 0x422   :  { %855 = vsyncpa [#allocation7 + $0x1], 1 }

</bundles_post_ra>
